<compile_context>
chip_gen: v7x
topology: tpu7x:2x2x1
jax: 0.10.0
libtpu: 0.0.40
codegen_flags: <defaults>
</compile_context>

<pallas_src>
import math
from functools import partial

import jax
import jax.numpy as jnp
from jax.experimental import pallas as pl
from jax.experimental.pallas import tpu as pltpu


_VPU_FIRST_MAX_K = 8      # fan-in at/below which layer 0 runs as VPU FMAs
_LANES = 128
_SUBLANES = 8


def _round_up(v, m):
    return (v + m - 1) // m * m


def _cdiv(a, b):
    return -(-a // b)


# ----------------------------------------------------------------------------
# Fused kernel: the entire Linear+ReLU stack in one body.
#   refs layout: x_ref, w0, b0, w1, b1, ..., o_ref
# ----------------------------------------------------------------------------
def _fused_mlp_kernel(n_layers, vpu_first_k, x_ref, *refs):
    o_ref = refs[-1]
    x = x_ref[...]                                      # (TB, IN)

    if vpu_first_k:
        # Layer 0 has a tiny fan-in (e.g. 4): a Kx128 matmul would use <4% of
        # the MXU and add an MXU push/pop round trip on the critical path, so
        # run it as `vpu_first_k` broadcast-FMAs on the VPU, fully in f32.
        w0 = refs[0][...].astype(jnp.float32)           # (K, N0), tiny
        b0 = refs[1][...].astype(jnp.float32)           # (1, N0)
        xf = x.astype(jnp.float32)
        y = b0
        for k in range(vpu_first_k):                    # statically unrolled
            y = y + xf[:, k:k + 1] * w0[k:k + 1, :]
        h = jnp.maximum(y, 0.0)
        first = 1
    else:
        h = x
        first = 0

    for l in range(first, n_layers):                    # statically unrolled
        w = refs[2 * l][...]                            # pre-cast to bf16
        b = refs[2 * l + 1][...]                        # kept in f32
        y = jnp.dot(h.astype(w.dtype), w,               # bf16 MXU, f32 accum
                    preferred_element_type=jnp.float32)
        h = jnp.maximum(y + b, 0.0)                     # bias + ReLU in f32 (VPU)

    o_ref[...] = h.astype(o_ref.dtype)                  # (TB, OUT) true width


# ----------------------------------------------------------------------------
# Parameter construction / padding / pre-casting.
# ----------------------------------------------------------------------------
def init_nn_layers_params(key, input_channels, output_channels, dtype=jnp.float32):
    """Deterministic PyTorch-style init: U(-1/sqrt(fan_in), 1/sqrt(fan_in))."""
    dims = [input_channels] + list(output_channels)
    params = []
    for fan_in, fan_out in zip(dims[:-1], dims[1:]):
        key, kw, kb = jax.random.split(key, 3)
        bound = 1.0 / math.sqrt(fan_in)
        w = jax.random.uniform(kw, (fan_in, fan_out), dtype, -bound, bound)
        b = jax.random.uniform(kb, (1, fan_out), dtype, -bound, bound)
        params.append((w, b))
    return params


def pad_params_for_tpu(params, mxu_dtype=jnp.bfloat16):
    """Prepare (W, b) for the kernel.  Call ONCE, outside jit.

      * Hidden-layer output widths are zero-padded to a multiple of 128 lanes
        so every intermediate activation is lane-dense; padded columns stay
        exactly zero through bias-add + ReLU, so the math is unchanged.
      * The FINAL layer's output width is NOT padded: the HBM writeback is the
        dominant traffic term at large batch, and storing the true width
        writes ~8x fewer bytes than a 128-lane padded store.
      * Weights are pre-cast to the MXU dtype (bf16: MXU is bf16-native on
        v5e/v6e/v7x; f32 operands take a slow multi-pass path).  The first
        layer's weight stays f32 when its fan-in is small enough for the VPU
        path.  Biases stay f32 (bias-add runs in f32, so no in-kernel casts).
    """
    n = len(params)
    padded = []
    prev_out_pad = None
    for l, (w, b) in enumerate(params):
        fin, fout = w.shape
        fin_pad = fin if prev_out_pad is None else prev_out_pad
        fout_pad = fout if l == n - 1 else _round_up(fout, _LANES)
        keep_f32 = (l == 0 and fin <= _VPU_FIRST_MAX_K)
        w_dtype = w.dtype if keep_f32 else mxu_dtype
        wp = jnp.zeros((fin_pad, fout_pad), w_dtype).at[:fin, :fout].set(
            w.astype(w_dtype))
        bp = jnp.zeros((1, fout_pad), jnp.float32).at[:, :fout].set(
            b.astype(jnp.float32))
        padded.append((wp, bp))
        prev_out_pad = fout_pad
    return padded


# ----------------------------------------------------------------------------
# Batch tiling.
# ----------------------------------------------------------------------------
def _choose_batch_tile(B, batch_tile):
    # VMEM ceiling: v7x has 64 MiB physical (32 MiB scoped default) vs 128 MiB
    # on v5e/v6e; <=4096 rows keeps double-buffered I/O + f32 intermediates
    # comfortably under the scoped default on all three generations.
    batch_tile = max(_SUBLANES, min(batch_tile, 4096))
    if B >= 2 * _SUBLANES:
        # Guarantee >= 2 grid steps so dimension_semantics=("parallel",) can
        # shard the batch across both TensorCores on v7x.
        cap = min(batch_tile, _round_up(_cdiv(B, 2), _SUBLANES))
    else:
        cap = min(batch_tile, _round_up(B, _SUBLANES))
    # Shrink the tile so batch padding stays below one tile (don't round a
    # 300-row batch up to 512 rows of garbage compute + writeback).
    n_tiles = _cdiv(B, cap)
    return _round_up(_cdiv(B, n_tiles), _SUBLANES)


# ----------------------------------------------------------------------------
# Forward pass: one pallas_call for the whole stack, batch-tiled grid.
# ----------------------------------------------------------------------------
def nn_layers_forward(x, params_padded, *, batch_tile=512):
    B, IN = x.shape
    n_layers = len(params_padded)
    out_dim = params_padded[-1][0].shape[1]      # true (unpadded) final width

    tb = _choose_batch_tile(B, batch_tile)
    b_pad = _cdiv(B, tb) * tb
    if b_pad != B:
        x = jnp.pad(x, ((0, b_pad - B), (0, 0)))
    grid = (b_pad // tb,)

    vpu_first_k = IN if IN <= _VPU_FIRST_MAX_K else 0

    flat_params, param_specs = [], []
    for w, b in params_padded:
        flat_params.extend([w, b])
        # Constant index_map -> the (tiny) weights/biases stay VMEM-resident
        # across grid steps instead of being re-DMA'd per tile.
        param_specs.append(pl.BlockSpec(w.shape, lambda i: (0, 0)))
        param_specs.append(pl.BlockSpec(b.shape, lambda i: (0, 0)))
    # NOTE: pipeline_mode=pl.Buffered(1) on the weight specs would halve their
    # VMEM footprint; skipped since the savings are negligible (<150 KB here).

    out = pl.pallas_call(
        partial(_fused_mlp_kernel, n_layers, vpu_first_k),
        out_shape=jax.ShapeDtypeStruct((b_pad, out_dim), x.dtype),
        grid=grid,
        in_specs=[pl.BlockSpec((tb, IN), lambda i: (i, 0))] + param_specs,
        out_specs=pl.BlockSpec((tb, out_dim), lambda i: (i, 0)),
        compiler_params=pltpu.CompilerParams(
            dimension_semantics=("parallel",),   # shard batch across TCs (v7x)
        ),
    )(x, *flat_params)

    return out if b_pad == B else out[:B]


# ----------------------------------------------------------------------------
# main
# ----------------------------------------------------------------------------
if __name__ == "__main__":
    key = jax.random.PRNGKey(0)

    batch = 8
    input_channels = 4
    output_channels = (32, 32, 16)   # fc_blocks: 4->32, 32->32, 32->16

    kx, kp = jax.random.split(key)
    x = jax.random.normal(kx, (batch, input_channels), dtype=jnp.float32)
    params = init_nn_layers_params(kp, input_channels, output_channels)
    params_padded = pad_params_for_tpu(params)   # once, outside jit (bf16 weights)

    fwd = jax.jit(nn_layers_forward)
    out = jax.block_until_ready(fwd(x, params_padded))

    # Pure-f32 reference (elementwise formulation so the reference itself does
    # not use the TPU's reduced-precision matmul default).  The kernel uses
    # bf16 MXU operands with f32 accumulation, so compare with bf16-level
    # tolerances.
    ref = x
    for w, b in params:
        ref = jnp.maximum((ref[:, :, None] * w[None, :, :]).sum(axis=1) + b, 0.0)

    assert out.shape == (batch, output_channels[-1])
    assert jnp.allclose(out, ref, atol=3e-2, rtol=3e-2), (
        float(jnp.max(jnp.abs(out - ref))))

    print("KERNEL_OK")
</pallas_src>

<mosaic_0001>
module attributes {stable_mosaic.version = 11 : i64} {
  func.func @_fused_mlp_kernel(%arg0: i32, %arg1: memref<8x4xf32, #tpu.memory_space<vmem>>, %arg2: memref<4x128xf32, #tpu.memory_space<vmem>>, %arg3: memref<1x128xf32, #tpu.memory_space<vmem>>, %arg4: memref<128x128xbf16, #tpu.memory_space<vmem>>, %arg5: memref<1x128xf32, #tpu.memory_space<vmem>>, %arg6: memref<128x16xbf16, #tpu.memory_space<vmem>>, %arg7: memref<1x16xf32, #tpu.memory_space<vmem>>, %arg8: memref<8x16xf32, #tpu.memory_space<vmem>>) attributes {dimension_semantics = [#tpu.dimension_semantics<parallel>], iteration_bounds = array<i64: 1>, scalar_prefetch = 0 : i64, scratch_operands = 0 : i64, tpu.core_type = #tpu.core_type<tc>, window_params = [{transform_indices = @transform_0, window_bounds = array<i64: 8, 4>}, {pipeline_mode = #tpu.pipeline_mode<synchronous>, transform_indices = @transform_1, window_bounds = array<i64: 4, 128>}, {pipeline_mode = #tpu.pipeline_mode<synchronous>, transform_indices = @transform_2, window_bounds = array<i64: 1, 128>}, {pipeline_mode = #tpu.pipeline_mode<synchronous>, transform_indices = @transform_3, window_bounds = array<i64: 128, 128>}, {pipeline_mode = #tpu.pipeline_mode<synchronous>, transform_indices = @transform_4, window_bounds = array<i64: 1, 128>}, {pipeline_mode = #tpu.pipeline_mode<synchronous>, transform_indices = @transform_5, window_bounds = array<i64: 128, 16>}, {pipeline_mode = #tpu.pipeline_mode<synchronous>, transform_indices = @transform_6, window_bounds = array<i64: 1, 16>}, {transform_indices = @transform_7, window_bounds = array<i64: 8, 16>}]} {
    %c0 = arith.constant 0 : index
    %c0_0 = arith.constant 0 : index
    %0 = vector.load %arg1[%c0, %c0_0] : memref<8x4xf32, #tpu.memory_space<vmem>>, vector<8x4xf32>
    %c0_1 = arith.constant 0 : index
    %c0_2 = arith.constant 0 : index
    %1 = vector.load %arg2[%c0_1, %c0_2] : memref<4x128xf32, #tpu.memory_space<vmem>>, vector<4x128xf32>
    %c0_3 = arith.constant 0 : index
    %c0_4 = arith.constant 0 : index
    %2 = vector.load %arg3[%c0_3, %c0_4] : memref<1x128xf32, #tpu.memory_space<vmem>>, vector<1x128xf32>
    %3 = vector.extract_strided_slice %0 {offsets = [0, 0], sizes = [8, 1], strides = [1, 1]} : vector<8x4xf32> to vector<8x1xf32>
    %4 = vector.extract_strided_slice %1 {offsets = [0, 0], sizes = [1, 128], strides = [1, 1]} : vector<4x128xf32> to vector<1x128xf32>
    %5 = vector.broadcast %3 : vector<8x1xf32> to vector<8x128xf32>
    %6 = vector.broadcast %4 : vector<1x128xf32> to vector<8x128xf32>
    %7 = arith.mulf %5, %6 : vector<8x128xf32>
    %8 = vector.broadcast %2 : vector<1x128xf32> to vector<8x128xf32>
    %9 = arith.addf %8, %7 : vector<8x128xf32>
    %10 = vector.extract_strided_slice %0 {offsets = [0, 1], sizes = [8, 1], strides = [1, 1]} : vector<8x4xf32> to vector<8x1xf32>
    %11 = vector.extract_strided_slice %1 {offsets = [1, 0], sizes = [1, 128], strides = [1, 1]} : vector<4x128xf32> to vector<1x128xf32>
    %12 = vector.broadcast %10 : vector<8x1xf32> to vector<8x128xf32>
    %13 = vector.broadcast %11 : vector<1x128xf32> to vector<8x128xf32>
    %14 = arith.mulf %12, %13 : vector<8x128xf32>
    %15 = arith.addf %9, %14 : vector<8x128xf32>
    %16 = vector.extract_strided_slice %0 {offsets = [0, 2], sizes = [8, 1], strides = [1, 1]} : vector<8x4xf32> to vector<8x1xf32>
    %17 = vector.extract_strided_slice %1 {offsets = [2, 0], sizes = [1, 128], strides = [1, 1]} : vector<4x128xf32> to vector<1x128xf32>
    %18 = vector.broadcast %16 : vector<8x1xf32> to vector<8x128xf32>
    %19 = vector.broadcast %17 : vector<1x128xf32> to vector<8x128xf32>
    %20 = arith.mulf %18, %19 : vector<8x128xf32>
    %21 = arith.addf %15, %20 : vector<8x128xf32>
    %22 = vector.extract_strided_slice %0 {offsets = [0, 3], sizes = [8, 1], strides = [1, 1]} : vector<8x4xf32> to vector<8x1xf32>
    %23 = vector.extract_strided_slice %1 {offsets = [3, 0], sizes = [1, 128], strides = [1, 1]} : vector<4x128xf32> to vector<1x128xf32>
    %24 = vector.broadcast %22 : vector<8x1xf32> to vector<8x128xf32>
    %25 = vector.broadcast %23 : vector<1x128xf32> to vector<8x128xf32>
    %26 = arith.mulf %24, %25 : vector<8x128xf32>
    %27 = arith.addf %21, %26 : vector<8x128xf32>
    %cst = arith.constant 0.000000e+00 : f32
    %28 = vector.broadcast %cst : f32 to vector<8x128xf32>
    %29 = arith.maximumf %27, %28 : vector<8x128xf32>
    %c0_5 = arith.constant 0 : index
    %c0_6 = arith.constant 0 : index
    %30 = vector.load %arg4[%c0_5, %c0_6] : memref<128x128xbf16, #tpu.memory_space<vmem>>, vector<128x128xbf16>
    %c0_7 = arith.constant 0 : index
    %c0_8 = arith.constant 0 : index
    %31 = vector.load %arg5[%c0_7, %c0_8] : memref<1x128xf32, #tpu.memory_space<vmem>>, vector<1x128xf32>
    %32 = arith.truncf %29 : vector<8x128xf32> to vector<8x128xbf16>
    %cst_9 = arith.constant dense<0.000000e+00> : vector<8x128xf32>
    %33 = tpu.matmul %32, %30, %cst_9 {dimension_numbers = #tpu.dot_dimension_numbers<[1], [0], [0], [1], [0, 0, 1, 1], [], []>} : vector<8x128xbf16>, vector<128x128xbf16>, vector<8x128xf32> -> vector<8x128xf32>
    %34 = vector.broadcast %31 : vector<1x128xf32> to vector<8x128xf32>
    %35 = arith.addf %33, %34 : vector<8x128xf32>
    %cst_10 = arith.constant 0.000000e+00 : f32
    %36 = vector.broadcast %cst_10 : f32 to vector<8x128xf32>
    %37 = arith.maximumf %35, %36 : vector<8x128xf32>
    %c0_11 = arith.constant 0 : index
    %c0_12 = arith.constant 0 : index
    %38 = vector.load %arg6[%c0_11, %c0_12] : memref<128x16xbf16, #tpu.memory_space<vmem>>, vector<128x16xbf16>
    %c0_13 = arith.constant 0 : index
    %c0_14 = arith.constant 0 : index
    %39 = vector.load %arg7[%c0_13, %c0_14] : memref<1x16xf32, #tpu.memory_space<vmem>>, vector<1x16xf32>
    %40 = arith.truncf %37 : vector<8x128xf32> to vector<8x128xbf16>
    %cst_15 = arith.constant dense<0.000000e+00> : vector<8x16xf32>
    %41 = tpu.matmul %40, %38, %cst_15 {dimension_numbers = #tpu.dot_dimension_numbers<[1], [0], [0], [1], [0, 0, 1, 1], [], []>} : vector<8x128xbf16>, vector<128x16xbf16>, vector<8x16xf32> -> vector<8x16xf32>
    %42 = vector.broadcast %39 : vector<1x16xf32> to vector<8x16xf32>
    %43 = arith.addf %41, %42 : vector<8x16xf32>
    %cst_16 = arith.constant 0.000000e+00 : f32
    %44 = vector.broadcast %cst_16 : f32 to vector<8x16xf32>
    %45 = arith.maximumf %43, %44 : vector<8x16xf32>
    %c0_17 = arith.constant 0 : index
    %c0_18 = arith.constant 0 : index
    %46 = vector.load %arg8[%c0_17, %c0_18] : memref<8x16xf32, #tpu.memory_space<vmem>>, vector<8x16xf32>
    tpu.vector_store %arg8[%c0_17, %c0_18], %45 {strides = array<i32>} : memref<8x16xf32, #tpu.memory_space<vmem>>, vector<8x16xf32>,
    return
  }
  func.func @transform_0(%arg0: i32) -> (i32, i32) {
    %c0_i32 = arith.constant 0 : i32
    %c0_i32_0 = arith.constant 0 : i32
    return %arg0, %c0_i32 : i32, i32
  }
  func.func @transform_1(%arg0: i32) -> (i32, i32) {
    %c0_i32 = arith.constant 0 : i32
    %c0_i32_0 = arith.constant 0 : i32
    %c0_i32_1 = arith.constant 0 : i32
    return %c0_i32, %c0_i32_0 : i32, i32
  }
  func.func @transform_2(%arg0: i32) -> (i32, i32) {
    %c0_i32 = arith.constant 0 : i32
    %c0_i32_0 = arith.constant 0 : i32
    %c0_i32_1 = arith.constant 0 : i32
    return %c0_i32, %c0_i32_0 : i32, i32
  }
  func.func @transform_3(%arg0: i32) -> (i32, i32) {
    %c0_i32 = arith.constant 0 : i32
    %c0_i32_0 = arith.constant 0 : i32
    %c0_i32_1 = arith.constant 0 : i32
    return %c0_i32, %c0_i32_0 : i32, i32
  }
  func.func @transform_4(%arg0: i32) -> (i32, i32) {
    %c0_i32 = arith.constant 0 : i32
    %c0_i32_0 = arith.constant 0 : i32
    %c0_i32_1 = arith.constant 0 : i32
    return %c0_i32, %c0_i32_0 : i32, i32
  }
  func.func @transform_5(%arg0: i32) -> (i32, i32) {
    %c0_i32 = arith.constant 0 : i32
    %c0_i32_0 = arith.constant 0 : i32
    %c0_i32_1 = arith.constant 0 : i32
    return %c0_i32, %c0_i32_0 : i32, i32
  }
  func.func @transform_6(%arg0: i32) -> (i32, i32) {
    %c0_i32 = arith.constant 0 : i32
    %c0_i32_0 = arith.constant 0 : i32
    %c0_i32_1 = arith.constant 0 : i32
    return %c0_i32, %c0_i32_0 : i32, i32
  }
  func.func @transform_7(%arg0: i32) -> (i32, i32) {
    %c0_i32 = arith.constant 0 : i32
    %c0_i32_0 = arith.constant 0 : i32
    return %arg0, %c0_i32 : i32, i32
  }
}

</mosaic_0001>

<bundles_post_ra>
// kernel: nn_layers_forward.1
= control target key start
LH: loop header
LB: loop body
LE: loop exit
PB: predicated region body
PF: predicated region fallthrough
CT: control target
= control target key end

     0   :  { %v450_v2 = vmov 0   ;;  %v451_v3 = vmov 2   ;;  %v452_v4 = vmov 0.0   ;;  %v453_v6 = vmov 1   ;;  %s590_s0 = inlined_call_operand.vmem [shape: f32[8,4], index: 0, kind: input, shape index: {}]   ;;  %s591_s1 = inlined_call_operand.vmem [shape: f32[4,128], index: 1, kind: input, shape index: {}]   ;;  %s592_s2 = inlined_call_operand.vmem [shape: f32[1,128], index: 2, kind: input, shape index: {}]   ;;  %s593_s3 = inlined_call_operand.vmem [shape: bf16[128,128], index: 3, kind: input, shape index: {}]   ;;  %s594_s4 = inlined_call_operand.vmem [shape: f32[1,128], index: 4, kind: input, shape index: {}]   ;;  %s595_s5 = inlined_call_operand.vmem [shape: bf16[128,16], index: 5, kind: input, shape index: {}]   ;;  %s596_s6 = inlined_call_operand.vmem [shape: f32[1,16], index: 6, kind: input, shape index: {}]   ;;  %s597_s7 = inlined_call_operand.hbm [shape: f32[8,16], index: 7, kind: output, shape index: {}]  }
   0x1   :  { %v28_v0 = vld [vmem:[%s590_s0] sm:$0xff]  ;;  %405 = vset.pattern.permute.xlu0 %v450_v2  ;;  %407 = vset.pattern.permute.xlu1 %v451_v3  ;;  %v411_v5 = vld [vmem:[%s593_s3 + $0x8] sm:$0xff]   ;;  %v454_v7 = vmov 3   ;;  %v412_v8 = vld [vmem:[%s593_s3 + $0x10] sm:$0xff]  }
   0x2   :  { %v410_v1 = vld [vmem:[%s593_s3] sm:$0xff]   ;;  %33 = vperm.xlu0 %405, %v28_v0   ;;  %59 = vperm.xlu1 %407, %v28_v0   ;;  %v413_v9 = vld [vmem:[%s593_s3 + $0x18] sm:$0xff]  }
   0x3   :  { %358 = vmatprep.subr.bf16.mxu0 %v452_v4  ;;  %378 = vmatprep.subr.bf16.mxu1 %v452_v4 }
   0x4   :  { %359 = vmatpush3.bf16.msra.mxu0 %v410_v1 }
   0x5   :  { %360 = vmatprep.subr.bf16.mxu0 %v452_v4 }
   0x6   :  { %406 = vset.pattern.permute.xlu0 %v453_v6  ;;  %408 = vset.pattern.permute.xlu1 %v454_v7 }
   0x7   :  { %49 = vperm.xlu0 %406, %v28_v0   ;;  %69 = vperm.xlu1 %408, %v28_v0  }
   0x8   :  { %361 = vmatpush3.bf16.msra.mxu0 %v411_v5 }
   0x9   :  { %362 = vmatprep.subr.bf16.mxu0 %v452_v4 }
   0xb   :  { %409 = vset.pattern.permute.xlu0 %v454_v7 }
   0xc   :  { %363 = vmatpush3.bf16.msra.mxu0 %v412_v8 }
   0xd   :  { %364 = vmatprep.subr.bf16.mxu0 %v452_v4 }
   0xe   :  { %12 = vsyncpa [#allocation3], 0  ;;  %v414_v10 = vld [vmem:[%s593_s3 + $0x20] sm:$0xff]   ;;  %vm455_vm0 = vmmov 0   ;;  %v415_v12 = vld [vmem:[%s593_s3 + $0x28] sm:$0xff]   ;;  %v36_v20 = vlaneseq  ;;  %s456_s15 = smov [#allocation2]  }
   0xf   :  { %374 = vmatprep.mubr.msk.bf16.mxu0 %vm455_vm0, %v452_v4  ;;  %394 = vmatprep.mubr.msk.bf16.mxu1 %vm455_vm0, %v452_v4  ;;  %v418_v11 = vld [vmem:[%s595_s5] sm:$0xff]   ;;  %v419_v13 = vld [vmem:[%s595_s5 + $0x8] sm:$0xff]   ;;  %v416_v14 = vld [vmem:[%s593_s3 + $0x30] sm:$0xff]   ;;  %vm305_vm1 = vcmask 130048  }
  0x10   :  { %365 = vmatpush3.bf16.msra.mxu0 %v413_v9  ;;  %379 = vmatpush3.bf16.msra.mxu1 %v418_v11  ;;  %v420_v15 = vld [vmem:[%s595_s5 + $0x10] sm:$0xff]   ;;  %v417_v16 = vld [vmem:[%s593_s3 + $0x38] sm:$0xff]   ;;  %v422_v18 = vld [vmem:[%s595_s5 + $0x20] sm:$0xff]   ;;  %v37_v21 = vshrl.u32 %v36_v20, 7 }
  0x11   :  { %366 = vmatprep.subr.bf16.mxu0 %v452_v4  ;;  %380 = vmatprep.subr.bf16.mxu1 %v452_v4  ;;  %v421_v17 = vld [vmem:[%s595_s5 + $0x18] sm:$0xff]   ;;  %v423_v19 = vld [vmem:[%s595_s5 + $0x28] sm:$0xff]   ;;  %v29_v23 = vld [vmem:[%s591_s1] sm:$0xf] }
  0x12   :  { %v38_v22 = vsub.s32 0, %v37_v21  ;;  %v54_v25 = vsub.s32 1, %v37_v21  ;;  %v64_v27 = vsub.s32 2, %v37_v21  ;;  %v74_v29 = vsub.s32 3, %v37_v21  ;;  %v321_v32 = vld [vmem:[%s592_s2] ss:$0 sm:$0xff] }
  0x13   :  { %v424_v46 = vld [vmem:[%s595_s5 + $0x30] sm:$0xff]   ;;  %v425_v47 = vld [vmem:[%s595_s5 + $0x38] sm:$0xff]   ;;  %v322_v48 = vld [vmem:[%s594_s4] ss:$0 sm:$0xff]  ;;  %s313_s5 = sshll.u32 %s456_s15, 4  ;;  %s314_s5 = int_to_ptr.vmem [resolvable:$true] %s313_s5 }
  0x14   :  { %367 = vmatpush3.bf16.msra.mxu0 %v414_v10  ;;  %381 = vmatpush3.bf16.msra.mxu1 %v419_v13  ;;  %v39_v24 = vrot.slane %v29_v23, %v38_v22  ;;  %v55_v31 = vrot.slane %v29_v23, %v54_v25  ;;  %v65_v33 = vrot.slane %v29_v23, %v64_v27  ;;  %v331_v56 = vld [vmem:[%s596_s6] ss:$0 sm:$0xff]  ;;  %s426_s4 = scalar_lea.vmem %s314_s5, 128  ;;  %p431_p1 = scmp.lt.s32.totalorder %s314_s5, %s314_s5 }
  0x15   :  { %368 = vmatprep.subr.bf16.mxu0 %v452_v4  ;;  %382 = vmatprep.subr.bf16.mxu1 %v452_v4  ;;  %v75_v34 = vrot.slane %v29_v23, %v74_v29  ;;  %p427_p0 = scmp.ne.s32.totalorder %s314_s5, %s426_s4  ;;  %p432_p2 = scmp.lt.s32.totalorder %s426_s4, %s426_s4 }
  0x17   :  { %p433_p3 = por %p432_p2, %p431_p1 }
  0x18   :  { %369 = vmatpush3.bf16.msra.mxu0 %v415_v12  ;;  %383 = vmatpush3.bf16.msra.mxu1 %v420_v15 }
  0x19   :  { %370 = vmatprep.subr.bf16.mxu0 %v452_v4  ;;  %384 = vmatprep.subr.bf16.mxu1 %v452_v4  ;;  %p434_p4 = pnand %p433_p3, %p427_p0 }
  0x1c   :  { %371 = vmatpush3.bf16.msra.mxu0 %v416_v14  ;;  %385 = vmatpush3.bf16.msra.mxu1 %v421_v17 }
  0x1d   :  { %372 = vmatprep.subr.bf16.mxu0 %v452_v4  ;;  %386 = vmatprep.subr.bf16.mxu1 %v452_v4 }
  0x20   :  { %373 = vmatpush3.bf16.msra.mxu0 %v417_v16  ;;  %387 = vmatpush3.bf16.msra.mxu1 %v422_v18 }
  0x21   :  { %388 = vmatprep.subr.bf16.mxu1 %v452_v4 }
  0x24   :  { %389 = vmatpush3.bf16.msra.mxu1 %v423_v19 }
  0x25   :  { %390 = vmatprep.subr.bf16.mxu1 %v452_v4 }
  0x28   :  { %391 = vmatpush3.bf16.msra.mxu1 %v424_v46 }
  0x29   :  { %392 = vmatprep.subr.bf16.mxu1 %v452_v4 }
  0x2c   :  { %393 = vmatpush3.bf16.msra.mxu1 %v425_v47 }
  0x81   :  { %v34_v26 = vpop.permute.xlu0 %33  ;;  %v60_v28 = vpop.permute.xlu1 %59 }
  0x82   :  { %v40_v30 = vmul.f32 %v39_v24, %v34_v26  ;;  %v66_v39 = vmul.f32 %v65_v33, %v60_v28 }
  0x84   :  { %v47_v37 = vadd.f32 %v321_v32, %v40_v30 }
  0x86   :  { %v50_v35 = vpop.permute.xlu0 %49  ;;  %v70_v36 = vpop.permute.xlu1 %69 }
  0x87   :  { %v56_v38 = vmul.f32 %v55_v31, %v50_v35  ;;  %v76_v41 = vmul.f32 %v75_v34, %v70_v36 }
  0x89   :  { %v57_v40 = vadd.f32 %v56_v38, %v47_v37 }
  0x8b   :  { %v67_v42 = vadd.f32 %v66_v39, %v57_v40 }
  0x8d   :  { %v77_v43 = vadd.f32 %v76_v41, %v67_v42 }
  0x8f   :  { %v78_v44 = vmax.f32 %v77_v43, 0.0 }
  0x91   :  { %v96_v45 = vpack.c.bf16 %v78_v44, %v78_v44 }
  0x93   :  { %375 = vmatmul.mubr.bf16.vlgmr.msra.gmra.mrb[0].mxu0 %v96_v45 }
 0x166   :  { %v185_v49 = vpop.f32.mrb[0].mxu0 }
 0x167   :  { %v186_v50 = vadd.f32 %v322_v48, %v185_v49  ;;  %v376_v51 = vpop.f32.mrb[1].mxu0 }
 0x168   :  { %v188_v52 = vpop.f32.mrb[2].mxu0 }
 0x169   :  { %v191_v53 = vmax.f32 %v186_v50, 0.0  ;;  %v377_v54 = vpop.f32.mrb[3].mxu0 }
 0x16b   :  { %v209_v55 = vpack.c.bf16 %v191_v53, %v191_v53 }
 0x16d   :  { %395 = vmatmul.mubr.bf16.vlgmr.msra.gmra.mrb[0].mxu1 %v209_v55 }
 0x240   :  { %v298_v57 = vpop.f32.mrb[0].mxu1 }
 0x241   :  { %v299_v58 = vadd.f32 %v331_v56, %v298_v57  ;;  %v396_v59 = vpop.f32.mrb[1].mxu1 }
 0x242   :  { %v301_v60 = vpop.f32.mrb[2].mxu1 }
 0x243   :  { %v304_v61 = vmax.f32 %v299_v58, 0.0  ;;  %v397_v62 = vpop.f32.mrb[3].mxu1 }
 0x245   :  { %306 = vst.msk [vmem:[#allocation2] sm:$0xff] %vm305_vm1, %v304_v61 }
 0x246   :  { %437 = shalt.err (!%p434_p4)
}
 0x247   :  { %s438_s17 = scalar_lea.hbm %s597_s7, 128 }
 0x248   :  { %p439_p5 = scmp.ne.s32.totalorder %s597_s7, %s438_s17  ;;  %p442_p6 = scmp.lt.u32.totalorder %s438_s17, %s597_s7 }
 0x24a   :  { %p444_p7 = pnand %p442_p6, %p439_p5 }
 0x24c   :  { %447 = shalt.err (!%p444_p7)
}
 0x24d   :  { %316 = dma.vmem_to_hbm [thread:$0]  %s314_s5, 128, %s597_s7, [#allocation3]  }
 0x24e   :  { %448 = dma.done.wait [#allocation3], 128  }
 0x24f   :  { %449 = vsyncadd [#allocation3], 4294967168 }
 0x250   :  { %320 = vsyncpa [#allocation3], 1 }

</bundles_post_ra>
